<compile_context>
chip_gen: v6e
topology: v6e:2x2x1
jax: 0.10.0
libtpu: 0.0.40
codegen_flags: <defaults>
</compile_context>

<pallas_src>
import jax
import jax.numpy as jnp
from jax.experimental import pallas as pl
from jax.experimental.pallas import tpu as pltpu


def _round_up(x, m):
    return (x + m - 1) // m * m


def actor_kernel(state_ref, w1_ref, b1_ref, w2_ref, b2_ref, w3_ref, b3_ref,
                 out_ref):
    # fc1 + relu   (bf16 operands, f32 accumulate, f32 elementwise)
    x = jnp.dot(state_ref[...].astype(jnp.bfloat16), w1_ref[...],
                preferred_element_type=jnp.float32)
    x = jnp.maximum(x + b1_ref[...], 0.0)

    # fc2 + relu
    x = jnp.dot(x.astype(jnp.bfloat16), w2_ref[...],
                preferred_element_type=jnp.float32)
    x = jnp.maximum(x + b2_ref[...], 0.0)

    # fc3 + tanh (output lanes padded to 128; padded lanes are tanh(0)=0)
    x = jnp.dot(x.astype(jnp.bfloat16), w3_ref[...],
                preferred_element_type=jnp.float32)
    out_ref[...] = jnp.tanh(x + b3_ref[...]).astype(out_ref.dtype)


def actor_forward(state, params, action_dim, *, block_batch=256):
    batch, state_dim = state.shape
    fc1_pad = params["w1"].shape[1]
    fc2_dim = params["w2"].shape[1]
    out_pad = params["w3"].shape[1]

    # Row tile: up to `block_batch` rows, multiple of 8 sublanes.
    tb = min(block_batch, _round_up(batch, 8))
    padded_batch = _round_up(batch, tb)
    if padded_batch != batch:
        state = jnp.pad(state, ((0, padded_batch - batch), (0, 0)))

    grid = (padded_batch // tb,)
    row_map = lambda i: (i, 0)     # tiled over batch rows
    rep_map = lambda i: (0, 0)     # weights/biases resident across the grid

    out = pl.pallas_call(
        actor_kernel,
        out_shape=jax.ShapeDtypeStruct((padded_batch, out_pad), jnp.float32),
        grid=grid,
        in_specs=[
            pl.BlockSpec((tb, state_dim), row_map),      # state rows
            pl.BlockSpec((state_dim, fc1_pad), rep_map),  # W1 (bf16)
            pl.BlockSpec((1, fc1_pad), rep_map),          # b1 (f32)
            pl.BlockSpec((fc1_pad, fc2_dim), rep_map),    # W2 (bf16)
            pl.BlockSpec((1, fc2_dim), rep_map),          # b2 (f32)
            pl.BlockSpec((fc2_dim, out_pad), rep_map),    # W3 (bf16)
            pl.BlockSpec((1, out_pad), rep_map),          # b3 (f32)
        ],
        out_specs=pl.BlockSpec((tb, out_pad), row_map),
        compiler_params=pltpu.CompilerParams(
            dimension_semantics=("parallel",),            # megacore split on v7x
            vmem_limit_bytes=32 * 1024 * 1024,            # safe under v7x 64 MiB
        ),
    )(state, params["w1"], params["b1"], params["w2"], params["b2"],
      params["w3"], params["b3"])

    return out[:batch, :action_dim]


def init_actor_params(key, state_dim, action_dim, fc1_dim=400, fc2_dim=256):
    """Mirror the PyTorch Actor's reset_parameters().

    hidden_init uses 1/sqrt(weight.size(0)) == 1/sqrt(out_features) for the
    weight range (as written in the reference module); biases keep the default
    nn.Linear range 1/sqrt(in_features). Weights are stored transposed,
    i.e. (in_features, out_features), padded to lane-dense shapes and cast to
    bfloat16 (biases stay f32 since they are added post-accumulation).
    """
    ks = jax.random.split(key, 6)

    def uni(k, shape, lim):
        return jax.random.uniform(k, shape, jnp.float32, -lim, lim)

    w1 = uni(ks[0], (state_dim, fc1_dim), 1.0 / (fc1_dim ** 0.5))
    b1 = uni(ks[1], (1, fc1_dim), 1.0 / (state_dim ** 0.5))
    w2 = uni(ks[2], (fc1_dim, fc2_dim), 1.0 / (fc2_dim ** 0.5))
    b2 = uni(ks[3], (1, fc2_dim), 1.0 / (fc1_dim ** 0.5))
    w3 = uni(ks[4], (fc2_dim, action_dim), 0.003)
    b3 = uni(ks[5], (1, action_dim), 1.0 / (fc2_dim ** 0.5))

    fc1_pad = _round_up(fc1_dim, 128)          # 400 -> 512
    out_pad = _round_up(max(action_dim, 1), 128)  # action_dim -> 128

    params = {
        "w1": jnp.pad(w1, ((0, 0), (0, fc1_pad - fc1_dim))).astype(jnp.bfloat16),
        "b1": jnp.pad(b1, ((0, 0), (0, fc1_pad - fc1_dim))),
        "w2": jnp.pad(w2, ((0, fc1_pad - fc1_dim), (0, 0))).astype(jnp.bfloat16),
        "b2": b2,
        "w3": jnp.pad(w3, ((0, 0), (0, out_pad - action_dim))).astype(jnp.bfloat16),
        "b3": jnp.pad(b3, ((0, 0), (0, out_pad - action_dim))),
    }
    return params


def actor_forward_ref(state, params, action_dim):
    """Pure-JAX reference using the same bf16 weights / f32 accumulation."""
    f32 = jnp.float32
    x = jnp.dot(state.astype(jnp.bfloat16), params["w1"],
                preferred_element_type=f32)
    x = jax.nn.relu(x + params["b1"])
    x = jnp.dot(x.astype(jnp.bfloat16), params["w2"],
                preferred_element_type=f32)
    x = jax.nn.relu(x + params["b2"])
    x = jnp.dot(x.astype(jnp.bfloat16), params["w3"],
                preferred_element_type=f32)
    return jnp.tanh(x + params["b3"])[:, :action_dim]


if __name__ == "__main__":
    key = jax.random.PRNGKey(0)
    k_param, k_state = jax.random.split(key, 2)

    batch, state_dim, action_dim = 8, 32, 8
    params = init_actor_params(k_param, state_dim, action_dim)

    state = jax.random.normal(k_state, (batch, state_dim), jnp.float32)

    a = actor_forward(state, params, action_dim)
    a = jax.block_until_ready(a)

    a_ref = actor_forward_ref(state, params, action_dim)
    assert a.shape == (batch, action_dim)
    assert bool(jnp.all(jnp.abs(a) <= 1.0))
    assert jnp.allclose(a, a_ref, atol=1e-3, rtol=1e-3)

    print("KERNEL_OK")
</pallas_src>

<mosaic_0001>
module attributes {stable_mosaic.version = 11 : i64} {
  func.func @actor_kernel(%arg0: i32, %arg1: memref<8x32xf32, #tpu.memory_space<vmem>>, %arg2: memref<32x512xbf16, #tpu.memory_space<vmem>>, %arg3: memref<1x512xf32, #tpu.memory_space<vmem>>, %arg4: memref<512x256xbf16, #tpu.memory_space<vmem>>, %arg5: memref<1x256xf32, #tpu.memory_space<vmem>>, %arg6: memref<256x128xbf16, #tpu.memory_space<vmem>>, %arg7: memref<1x128xf32, #tpu.memory_space<vmem>>, %arg8: memref<8x128xf32, #tpu.memory_space<vmem>>) attributes {dimension_semantics = [#tpu.dimension_semantics<parallel>], iteration_bounds = array<i64: 1>, scalar_prefetch = 0 : i64, scratch_operands = 0 : i64, tpu.core_type = #tpu.core_type<tc>, window_params = [{transform_indices = @transform_0, window_bounds = array<i64: 8, 32>}, {pipeline_mode = #tpu.pipeline_mode<synchronous>, transform_indices = @transform_1, window_bounds = array<i64: 32, 512>}, {pipeline_mode = #tpu.pipeline_mode<synchronous>, transform_indices = @transform_2, window_bounds = array<i64: 1, 512>}, {pipeline_mode = #tpu.pipeline_mode<synchronous>, transform_indices = @transform_3, window_bounds = array<i64: 512, 256>}, {pipeline_mode = #tpu.pipeline_mode<synchronous>, transform_indices = @transform_4, window_bounds = array<i64: 1, 256>}, {pipeline_mode = #tpu.pipeline_mode<synchronous>, transform_indices = @transform_5, window_bounds = array<i64: 256, 128>}, {pipeline_mode = #tpu.pipeline_mode<synchronous>, transform_indices = @transform_6, window_bounds = array<i64: 1, 128>}, {transform_indices = @transform_7, window_bounds = array<i64: 8, 128>}]} {
    %c0 = arith.constant 0 : index
    %c0_0 = arith.constant 0 : index
    %0 = vector.load %arg1[%c0, %c0_0] : memref<8x32xf32, #tpu.memory_space<vmem>>, vector<8x32xf32>
    %1 = arith.truncf %0 : vector<8x32xf32> to vector<8x32xbf16>
    %c0_1 = arith.constant 0 : index
    %c0_2 = arith.constant 0 : index
    %2 = vector.load %arg2[%c0_1, %c0_2] : memref<32x512xbf16, #tpu.memory_space<vmem>>, vector<32x512xbf16>
    %cst = arith.constant dense<0.000000e+00> : vector<8x512xf32>
    %3 = tpu.matmul %1, %2, %cst {dimension_numbers = #tpu.dot_dimension_numbers<[1], [0], [0], [1], [0, 0, 1, 1], [], []>} : vector<8x32xbf16>, vector<32x512xbf16>, vector<8x512xf32> -> vector<8x512xf32>
    %c0_3 = arith.constant 0 : index
    %c0_4 = arith.constant 0 : index
    %4 = vector.load %arg3[%c0_3, %c0_4] : memref<1x512xf32, #tpu.memory_space<vmem>>, vector<1x512xf32>
    %5 = vector.broadcast %4 : vector<1x512xf32> to vector<8x512xf32>
    %6 = arith.addf %3, %5 : vector<8x512xf32>
    %cst_5 = arith.constant 0.000000e+00 : f32
    %7 = vector.broadcast %cst_5 : f32 to vector<8x512xf32>
    %8 = arith.maximumf %6, %7 : vector<8x512xf32>
    %9 = arith.truncf %8 : vector<8x512xf32> to vector<8x512xbf16>
    %c0_6 = arith.constant 0 : index
    %c0_7 = arith.constant 0 : index
    %10 = vector.load %arg4[%c0_6, %c0_7] : memref<512x256xbf16, #tpu.memory_space<vmem>>, vector<512x256xbf16>
    %cst_8 = arith.constant dense<0.000000e+00> : vector<8x256xf32>
    %11 = tpu.matmul %9, %10, %cst_8 {dimension_numbers = #tpu.dot_dimension_numbers<[1], [0], [0], [1], [0, 0, 1, 1], [], []>} : vector<8x512xbf16>, vector<512x256xbf16>, vector<8x256xf32> -> vector<8x256xf32>
    %c0_9 = arith.constant 0 : index
    %c0_10 = arith.constant 0 : index
    %12 = vector.load %arg5[%c0_9, %c0_10] : memref<1x256xf32, #tpu.memory_space<vmem>>, vector<1x256xf32>
    %13 = vector.broadcast %12 : vector<1x256xf32> to vector<8x256xf32>
    %14 = arith.addf %11, %13 : vector<8x256xf32>
    %cst_11 = arith.constant 0.000000e+00 : f32
    %15 = vector.broadcast %cst_11 : f32 to vector<8x256xf32>
    %16 = arith.maximumf %14, %15 : vector<8x256xf32>
    %17 = arith.truncf %16 : vector<8x256xf32> to vector<8x256xbf16>
    %c0_12 = arith.constant 0 : index
    %c0_13 = arith.constant 0 : index
    %18 = vector.load %arg6[%c0_12, %c0_13] : memref<256x128xbf16, #tpu.memory_space<vmem>>, vector<256x128xbf16>
    %cst_14 = arith.constant dense<0.000000e+00> : vector<8x128xf32>
    %19 = tpu.matmul %17, %18, %cst_14 {dimension_numbers = #tpu.dot_dimension_numbers<[1], [0], [0], [1], [0, 0, 1, 1], [], []>} : vector<8x256xbf16>, vector<256x128xbf16>, vector<8x128xf32> -> vector<8x128xf32>
    %c0_15 = arith.constant 0 : index
    %c0_16 = arith.constant 0 : index
    %20 = vector.load %arg7[%c0_15, %c0_16] : memref<1x128xf32, #tpu.memory_space<vmem>>, vector<1x128xf32>
    %21 = vector.broadcast %20 : vector<1x128xf32> to vector<8x128xf32>
    %22 = arith.addf %19, %21 : vector<8x128xf32>
    %23 = math.tanh %22 : vector<8x128xf32>
    %c0_17 = arith.constant 0 : index
    %c0_18 = arith.constant 0 : index
    %24 = vector.load %arg8[%c0_17, %c0_18] : memref<8x128xf32, #tpu.memory_space<vmem>>, vector<8x128xf32>
    tpu.vector_store %arg8[%c0_17, %c0_18], %23 {strides = array<i32>} : memref<8x128xf32, #tpu.memory_space<vmem>>, vector<8x128xf32>,
    return
  }
  func.func @transform_0(%arg0: i32) -> (i32, i32) {
    %c0_i32 = arith.constant 0 : i32
    %c0_i32_0 = arith.constant 0 : i32
    return %arg0, %c0_i32 : i32, i32
  }
  func.func @transform_1(%arg0: i32) -> (i32, i32) {
    %c0_i32 = arith.constant 0 : i32
    %c0_i32_0 = arith.constant 0 : i32
    %c0_i32_1 = arith.constant 0 : i32
    return %c0_i32, %c0_i32_0 : i32, i32
  }
  func.func @transform_2(%arg0: i32) -> (i32, i32) {
    %c0_i32 = arith.constant 0 : i32
    %c0_i32_0 = arith.constant 0 : i32
    %c0_i32_1 = arith.constant 0 : i32
    return %c0_i32, %c0_i32_0 : i32, i32
  }
  func.func @transform_3(%arg0: i32) -> (i32, i32) {
    %c0_i32 = arith.constant 0 : i32
    %c0_i32_0 = arith.constant 0 : i32
    %c0_i32_1 = arith.constant 0 : i32
    return %c0_i32, %c0_i32_0 : i32, i32
  }
  func.func @transform_4(%arg0: i32) -> (i32, i32) {
    %c0_i32 = arith.constant 0 : i32
    %c0_i32_0 = arith.constant 0 : i32
    %c0_i32_1 = arith.constant 0 : i32
    return %c0_i32, %c0_i32_0 : i32, i32
  }
  func.func @transform_5(%arg0: i32) -> (i32, i32) {
    %c0_i32 = arith.constant 0 : i32
    %c0_i32_0 = arith.constant 0 : i32
    %c0_i32_1 = arith.constant 0 : i32
    return %c0_i32, %c0_i32_0 : i32, i32
  }
  func.func @transform_6(%arg0: i32) -> (i32, i32) {
    %c0_i32 = arith.constant 0 : i32
    %c0_i32_0 = arith.constant 0 : i32
    %c0_i32_1 = arith.constant 0 : i32
    return %c0_i32, %c0_i32_0 : i32, i32
  }
  func.func @transform_7(%arg0: i32) -> (i32, i32) {
    %c0_i32 = arith.constant 0 : i32
    %c0_i32_0 = arith.constant 0 : i32
    return %arg0, %c0_i32 : i32, i32
  }
}

</mosaic_0001>

<bundles_post_ra>
// kernel: tpu_custom_call.1
= control target key start
LH: loop header
LB: loop body
LE: loop exit
PB: predicated region body
PF: predicated region fallthrough
CT: control target
= control target key end

     0   :  { %12 = vsyncpa [#allocation3], 0  ;;  %s1407_s0 = inlined_call_operand.hbm [shape: f32[8,32], index: 0, kind: input, shape index: {}]   ;;  %s1408_s1 = inlined_call_operand.hbm [shape: bf16[32,512], index: 1, kind: input, shape index: {}]   ;;  %s1409_s2 = inlined_call_operand.hbm [shape: f32[1,512], index: 2, kind: input, shape index: {}]   ;;  %s1410_s3 = inlined_call_operand.hbm [shape: bf16[512,256], index: 3, kind: input, shape index: {}]   ;;  %s1411_s4 = inlined_call_operand.vmem [shape: f32[1,256], index: 4, kind: input, shape index: {}]   ;;  %s1412_s5 = inlined_call_operand.hbm [shape: bf16[256,128], index: 5, kind: input, shape index: {}]   ;;  %s1413_s6 = inlined_call_operand.vmem [shape: f32[1,128], index: 6, kind: input, shape index: {}]   ;;  %s1414_s7 = inlined_call_operand.hbm [shape: f32[8,128], index: 7, kind: output, shape index: {}]  }
   0x1   :  { %13 = vsyncpa [#allocation6], 0 }
   0x2   :  { %14 = vsyncpa [#allocation9], 0 }
   0x3   :  { %15 = vsyncpa [#allocation4], 0  ;;  %s1314_s24 = smov [#allocation5]  }
   0x4   :  { %s31_s25 = sshll.u32 %s1314_s24, 4  ;;  %s32_s25 = int_to_ptr.vmem [resolvable:$true] %s31_s25 }
   0x5   :  { %s1194_s26 = scalar_lea.vmem %s32_s25, 1024  ;;  %p1199_p1 = scmp.lt.s32.totalorder %s32_s25, %s32_s25 }
   0x6   :  { %p1195_p0 = scmp.ne.s32.totalorder %s32_s25, %s1194_s26  ;;  %p1200_p2 = scmp.lt.s32.totalorder %s1194_s26, %s1194_s26 }
   0x8   :  { %p1201_p3 = por %p1200_p2, %p1199_p1 }
   0xa   :  { %p1202_p4 = pnand %p1201_p3, %p1195_p0 }
   0xc   :  { %1205 = shalt.err (!%p1202_p4)
}
   0xd   :  { %s1315_s27 = smov 256   ;;  %s1316_s28 = smov 16  }
   0xe   :  { %37 = dma.hbm_to_vmem [thread:$0]  %s1408_s1, 1024, %s32_s25, [#allocation6], %s1315_s27, %s1315_s27, %s1316_s28  }
   0xf   :  { %s1317_s8 = smov [#allocation8]  }
  0x10   :  { %s53_s9 = sshll.u32 %s1317_s8, 4  ;;  %s54_s9 = int_to_ptr.vmem [resolvable:$true] %s53_s9 }
  0x11   :  { %s1214_s10 = scalar_lea.vmem %s54_s9, 8192  ;;  %p1219_p6 = scmp.lt.s32.totalorder %s54_s9, %s54_s9 }
  0x12   :  { %p1215_p5 = scmp.ne.s32.totalorder %s54_s9, %s1214_s10  ;;  %p1220_p7 = scmp.lt.s32.totalorder %s1214_s10, %s1214_s10 }
  0x14   :  { %p1221_p8 = por %p1220_p7, %p1219_p6 }
  0x16   :  { %p1222_p9 = pnand %p1221_p8, %p1215_p5 }
  0x18   :  { %1225 = shalt.err (!%p1222_p9)
}
  0x19   :  { %s1318_s11 = smov 128   ;;  %s1319_s12 = smov 8  }
  0x1a   :  { %59 = dma.hbm_to_vmem [thread:$0]  %s1410_s3, 8192, %s54_s9, [#allocation9], %s1318_s11, %s1318_s11, %s1319_s12  }
  0x1b   :  { %s1320_s15 = smov [#allocation2]   ;;  %s1321_s17 = smov [#allocation7]  }
  0x1c   :  { %s22_s16 = sshll.u32 %s1320_s15, 4  ;;  %s44_s1 = sshll.u32 %s1321_s17, 4  ;;  %s23_s16 = int_to_ptr.vmem [resolvable:$true] %s22_s16  ;;  %s45_s1 = int_to_ptr.vmem [resolvable:$true] %s44_s1 }
  0x1d   :  { %s1234_s18 = scalar_lea.vmem %s23_s16, 128  ;;  %p1239_p11 = scmp.lt.s32.totalorder %s23_s16, %s23_s16 }
  0x1e   :  { %p1235_p10 = scmp.ne.s32.totalorder %s23_s16, %s1234_s18  ;;  %p1240_p12 = scmp.lt.s32.totalorder %s1234_s18, %s1234_s18 }
  0x20   :  { %p1241_p13 = por %p1240_p12, %p1239_p11 }
  0x22   :  { %p1242_p0 = pnand %p1241_p13, %p1235_p10 }
  0x24   :  { %1245 = shalt.err (!%p1242_p0)
}
  0x25   :  { %25 = dma.hbm_to_vmem [thread:$0]  %s1407_s0, 128, %s23_s16, [#allocation3]  }
  0x26   :  { %s1254_s21 = scalar_lea.vmem %s45_s1, 64  ;;  %p1259_p2 = scmp.lt.s32.totalorder %s45_s1, %s45_s1 }
  0x27   :  { %p1255_p1 = scmp.ne.s32.totalorder %s45_s1, %s1254_s21  ;;  %p1260_p3 = scmp.lt.s32.totalorder %s1254_s21, %s1254_s21 }
  0x29   :  { %p1261_p4 = por %p1260_p3, %p1259_p2 }
  0x2b   :  { %p1262_p5 = pnand %p1261_p4, %p1255_p1 }
  0x2d   :  { %1265 = shalt.err (!%p1262_p5)
}
  0x2e   :  { %47 = dma.hbm_to_vmem [thread:$0]  %s1409_s2, 64, %s45_s1, [#allocation6]  }
  0x2f   :  { %s1322_s23 = smov [#allocation10]  }
  0x30   :  { %s67_s24 = sshll.u32 %s1322_s23, 4  ;;  %s68_s24 = int_to_ptr.vmem [resolvable:$true] %s67_s24 }
  0x31   :  { %s1274_s25 = scalar_lea.vmem %s68_s24, 2048  ;;  %p1279_p7 = scmp.lt.s32.totalorder %s68_s24, %s68_s24 }
  0x32   :  { %p1275_p6 = scmp.ne.s32.totalorder %s68_s24, %s1274_s25  ;;  %p1280_p8 = scmp.lt.s32.totalorder %s1274_s25, %s1274_s25 }
  0x34   :  { %p1281_p9 = por %p1280_p8, %p1279_p7 }
  0x36   :  { %p1282_p10 = pnand %p1281_p9, %p1275_p6 }
  0x38   :  { %1285 = shalt.err (!%p1282_p10)
}
  0x39   :  { %s1323_s0 = smov 64   ;;  %s1324_s26 = smov 4  }
  0x3a   :  { %73 = dma.hbm_to_vmem [thread:$0]  %s1412_s5, 2048, %s68_s24, [#allocation9], %s1323_s0, %s1323_s0, %s1324_s26  }
  0x3b   :  { %1306 = dma.done.wait [#allocation3], 128  }
  0x3c   :  { %1307 = vsyncadd [#allocation3], 4294967168 }
  0x3d   :  { %1308 = dma.done.wait [#allocation6], 1088  }
  0x3e   :  { %1309 = vsyncadd [#allocation6], 4294966208 }
  0x3f   :  { %1310 = dma.done.wait [#allocation9], 10240  }
  0x40   :  { %1311 = vsyncadd [#allocation9], 4294957056  ;;  %v1325_v0 = vmov 0   ;;  %v1060_v1 = vld [vmem:[#allocation5 + $0x24] ss:$16 sps:$4 sm:$0xff]   ;;  %v92_v5 = vld [vmem:[#allocation2] sm:$0xff] }
  0x41   :  { %200 = vmatprep.mubr.bf16.mxu1 %v1325_v0  ;;  %v1062_v2 = vld [vmem:[#allocation5 + $0x20] ss:$16 sps:$4 sm:$0xff]   ;;  %180 = vmatprep.subr.bf16.mxu1 %v1060_v1  ;;  %v1063_v3 = vld [vmem:[#allocation5 + $0x4] ss:$16 sps:$4 sm:$0xff]   ;;  %v1068_v6 = vld [vmem:[#allocation5 + $0x2c] ss:$16 sps:$4 sm:$0xff]   ;;  %v93_v8 = vpack.c.bf16 %v92_v5, %v92_v5 }
  0x42   :  { %v1065_v4 = vld [vmem:[#allocation5] ss:$16 sps:$4 sm:$0xff]   ;;  %181 = vmatpush1.bf16.msra.mxu1 %v1062_v2  ;;  %v1066_v7 = vld [vmem:[#allocation5 + $0x28] ss:$16 sps:$4 sm:$0xff]   ;;  %v1074_v10 = vld [vmem:[#allocation8 + $0x70] ss:$8 sps:$4 sm:$0xff]  }
  0x43   :  { %182 = vmatprep.subr.bf16.mxu1 %v1063_v3  ;;  %v1072_v9 = vld [vmem:[#allocation8 + $0x74] ss:$8 sps:$4 sm:$0xff]   ;;  %vm164_vm0 = vcmask 261120   ;;  %v1075_v11 = vld [vmem:[#allocation8 + $0x64] ss:$8 sps:$4 sm:$0xff]   ;;  %s1326_s30 = smov [#allocation11]  }
  0x44   :  { %v1071_v12 = vld [vmem:[#allocation5 + $0xc] ss:$16 sps:$4 sm:$0xff]   ;;  %654 = vmatprep.subr.bf16.mxu0 %v1072_v9  ;;  %v1078_v14 = vld [vmem:[#allocation8 + $0x54] ss:$8 sps:$4 sm:$0xff]   ;;  %v1084_v18 = vld [vmem:[#allocation8 + $0x44] ss:$8 sps:$4 sm:$0xff]  }
  0x45   :  { %655 = vmatpush1.bf16.msra.mxu0 %v1074_v10  ;;  %v1077_v13 = vld [vmem:[#allocation8 + $0x60] ss:$8 sps:$4 sm:$0xff]   ;;  %v1069_v15 = vld [vmem:[#allocation5 + $0x8] ss:$16 sps:$4 sm:$0xff]   ;;  %v1083_v17 = vld [vmem:[#allocation8 + $0x50] ss:$8 sps:$4 sm:$0xff]  }
  0x46   :  { %183 = vmatpush1.bf16.msra.mxu1 %v1065_v4  ;;  %656 = vmatprep.subr.bf16.mxu0 %v1075_v11  ;;  %v1082_v16 = vld [vmem:[#allocation8 + $0x174] ss:$8 sps:$4 sm:$0xff]   ;;  %v1080_v19 = vld [vmem:[#allocation8 + $0x170] ss:$8 sps:$4 sm:$0xff]   ;;  %v1088_v20 = vld [vmem:[#allocation8 + $0x164] ss:$8 sps:$4 sm:$0xff]  }
  0x47   :  { %221 = vmatprep.subr.bf16.mxu1 %v1068_v6  ;;  %v1089_v21 = vld [vmem:[#allocation8 + $0x40] ss:$8 sps:$4 sm:$0xff]   ;;  %v1090_v22 = vld [vmem:[#allocation8 + $0x34] ss:$8 sps:$4 sm:$0xff]   ;;  %v1095_v25 = vld [vmem:[#allocation8 + $0x30] ss:$8 sps:$4 sm:$0xff]  }
  0x48   :  { %v1086_v23 = vld [vmem:[#allocation8 + $0x160] ss:$8 sps:$4 sm:$0xff]   ;;  %v1094_v24 = vld [vmem:[#allocation8 + $0x154] ss:$8 sps:$4 sm:$0xff]   ;;  %v1096_v26 = vld [vmem:[#allocation8 + $0x24] ss:$8 sps:$4 sm:$0xff]  }
  0x49   :  { %942 = vmatmul.mubr.msk.bf16.vlgmr.msra.gmra.mxu1 %vm164_vm0, %v93_v8  ;;  %657 = vmatpush1.bf16.msra.mxu0 %v1077_v13  ;;  %v1092_v27 = vld [vmem:[#allocation8 + $0x150] ss:$8 sps:$4 sm:$0xff]   ;;  %v1100_v28 = vld [vmem:[#allocation8 + $0x144] ss:$8 sps:$4 sm:$0xff]   ;;  %v1101_v29 = vld [vmem:[#allocation8 + $0x20] ss:$8 sps:$4 sm:$0xff]  }
  0x4a   :  { %222 = vmatpush1.bf16.msra.mxu1 %v1066_v7  ;;  %241 = vmatprep.mubr.bf16.mxu1 %v1325_v0  ;;  %v1102_v30 = vld [vmem:[#allocation8 + $0x14] ss:$8 sps:$4 sm:$0xff]   ;;  %v1098_v31 = vld [vmem:[#allocation8 + $0x140] ss:$8 sps:$4 sm:$0xff]   ;;  %v1107_v33 = vld [vmem:[#allocation8 + $0x10] ss:$8 sps:$4 sm:$0xff]  }
  0x4b   :  { %223 = vmatprep.subr.bf16.mxu1 %v1071_v12  ;;  %658 = vmatprep.subr.bf16.mxu0 %v1078_v14  ;;  %v1106_v32 = vld [vmem:[#allocation8 + $0x134] ss:$8 sps:$4 sm:$0xff]   ;;  %v1108_v34 = vld [vmem:[#allocation8 + $0x4] ss:$8 sps:$4 sm:$0xff]   ;;  %v1104_v35 = vld [vmem:[#allocation8 + $0x130] ss:$8 sps:$4 sm:$0xff]   ;;  %v104_v12 = vlaneseq }
  0x4c   :  { %v1112_v36 = vld [vmem:[#allocation8 + $0x124] ss:$8 sps:$4 sm:$0xff]   ;;  %v1113_v37 = vld [vmem:[#allocation8] ss:$8 sps:$4 sm:$0xff]   ;;  %v1114_v38 = vld [vmem:[#allocation8 + $0xf4] ss:$8 sps:$4 sm:$0xff]  }
  0x4d   :  { %659 = vmatpush1.bf16.msra.mxu0 %v1083_v17  ;;  %v1110_v39 = vld [vmem:[#allocation8 + $0x120] ss:$8 sps:$4 sm:$0xff]   ;;  %v1118_v40 = vld [vmem:[#allocation8 + $0x114] ss:$8 sps:$4 sm:$0xff]   ;;  %v1119_v41 = vld [vmem:[#allocation8 + $0xf0] ss:$8 sps:$4 sm:$0xff]  }
  0x4e   :  { %224 = vmatpush1.bf16.msra.mxu1 %v1069_v15  ;;  %660 = vmatprep.subr.bf16.mxu0 %v1084_v18  ;;  %v1120_v42 = vld [vmem:[#allocation8 + $0xe4] ss:$8 sps:$4 sm:$0xff]   ;;  %v1116_v43 = vld [vmem:[#allocation8 + $0x110] ss:$8 sps:$4 sm:$0xff]   ;;  %v1125_v45 = vld [vmem:[#allocation8 + $0xe0] ss:$8 sps:$4 sm:$0xff]  }
  0x4f   :  { %695 = vmatprep.subr.bf16.mxu1 %v1082_v16  ;;  %v1124_v44 = vld [vmem:[#allocation8 + $0x104] ss:$8 sps:$4 sm:$0xff]   ;;  %v1126_v46 = vld [vmem:[#allocation8 + $0xd4] ss:$8 sps:$4 sm:$0xff]   ;;  %v1122_v47 = vld [vmem:[#allocation8 + $0x100] ss:$8 sps:$4 sm:$0xff]  }
  0x50   :  { %v1130_v48 = vld [vmem:[#allocation8 + $0x1f4] ss:$8 sps:$4 sm:$0xff]   ;;  %v1131_v49 = vld [vmem:[#allocation8 + $0xd0] ss:$8 sps:$4 sm:$0xff]   ;;  %v1132_v50 = vld [vmem:[#allocation8 + $0xc4] ss:$8 sps:$4 sm:$0xff]  }
  0x51   :  { %943 = vmatmul.mubr.msk.bf16.vlgmr.msra.gmra.mxu1 %vm164_vm0, %v93_v8  ;;  %661 = vmatpush1.bf16.msra.mxu0 %v1089_v21  ;;  %v1128_v51 = vld [vmem:[#allocation8 + $0x1f0] ss:$8 sps:$4 sm:$0xff]   ;;  %v1136_v52 = vld [vmem:[#allocation8 + $0x1e4] ss:$8 sps:$4 sm:$0xff]   ;;  %v1137_v53 = vld [vmem:[#allocation8 + $0xc0] ss:$8 sps:$4 sm:$0xff]  }
  0x52   :  { %696 = vmatpush1.bf16.msra.mxu1 %v1080_v19  ;;  %662 = vmatprep.subr.bf16.mxu0 %v1090_v22  ;;  %v1138_v54 = vld [vmem:[#allocation8 + $0xb4] ss:$8 sps:$4 sm:$0xff]   ;;  %v1134_v55 = vld [vmem:[#allocation8 + $0x1e0] ss:$8 sps:$4 sm:$0xff]   ;;  %v1143_v57 = vld [vmem:[#allocation8 + $0xb0] ss:$8 sps:$4 sm:$0xff]  }
  0x53   :  { %697 = vmatprep.subr.bf16.mxu1 %v1088_v20  ;;  %v1142_v56 = vld [vmem:[#allocation8 + $0x1d4] ss:$8 sps:$4 sm:$0xff]   ;;  %v1144_v58 = vld [vmem:[#allocation8 + $0xa4] ss:$8 sps:$4 sm:$0xff]   ;;  %v1140_v59 = vld [vmem:[#allocation8 + $0x1d0] ss:$8 sps:$4 sm:$0xff]  }
  0x54   :  { %v1148_v60 = vld [vmem:[#allocation8 + $0x1c4] ss:$8 sps:$4 sm:$0xff]   ;;  %v1149_v61 = vld [vmem:[#allocation8 + $0xa0] ss:$8 sps:$4 sm:$0xff]   ;;  %v1150_v63 = vld [vmem:[#allocation8 + $0x94] ss:$8 sps:$4 sm:$0xff]  }
  0x55   :  { %663 = vmatpush1.bf16.msra.mxu0 %v1095_v25  ;;  %v1146_v62 = vld [vmem:[#allocation8 + $0x1c0] ss:$8 sps:$4 sm:$0xff]   ;;  %v1154_v0 = vld [vmem:[#allocation8 + $0x1b4] ss:$8 sps:$4 sm:$0xff]   ;;  %v1152_v1 = vld [vmem:[#allocation8 + $0x1b0] ss:$8 sps:$4 sm:$0xff]  }
  0x56   :  { %698 = vmatpush1.bf16.msra.mxu1 %v1086_v23  ;;  %664 = vmatprep.subr.bf16.mxu0 %v1096_v26  ;;  %v1155_v2 = vld [vmem:[#allocation8 + $0x90] ss:$8 sps:$4 sm:$0xff]   ;;  %v1156_v3 = vld [vmem:[#allocation8 + $0x84] ss:$8 sps:$4 sm:$0xff]   ;;  %v1158_v5 = vld [vmem:[#allocation8 + $0x1a0] ss:$8 sps:$4 sm:$0xff]  }
  0x57   :  { %699 = vmatprep.subr.bf16.mxu1 %v1094_v24  ;;  %v1160_v4 = vld [vmem:[#allocation8 + $0x1a4] ss:$8 sps:$4 sm:$0xff]   ;;  %v1161_v6 = vld [vmem:[#allocation8 + $0x80] ss:$8 sps:$4 sm:$0xff]   ;;  %v1164_v7 = vld [vmem:[#allocation8 + $0x194] ss:$8 sps:$4 sm:$0xff]  }
  0x58   :  { %v1162_v8 = vld [vmem:[#allocation8 + $0x190] ss:$8 sps:$4 sm:$0xff]   ;;  %v1167_v9 = vld [vmem:[#allocation8 + $0x184] ss:$8 sps:$4 sm:$0xff]   ;;  %v1165_v10 = vld [vmem:[#allocation8 + $0x180] ss:$8 sps:$4 sm:$0xff]  }
  0x59   :  { %665 = vmatpush1.bf16.msra.mxu0 %v1101_v29  ;;  %v1168_v11 = vld [vmem:[#allocation10 + $0x78] sm:$0xff]   ;;  %v1384_v13 = vshrl.u32 %v104_v12, 7  ;;  %s923_s8 = sshll.u32 %s1326_s30, 4  ;;  %s924_s8 = int_to_ptr.vmem [resolvable:$true] %s923_s8 }
  0x5a   :  { %700 = vmatpush1.bf16.msra.mxu1 %v1092_v27  ;;  %666 = vmatprep.subr.bf16.mxu0 %v1102_v30  ;;  %v102_v15 = vld [vmem:[#allocation7] sm:$0xf]  ;;  %s1286_s9 = scalar_lea.vmem %s924_s8, 128  ;;  %p1291_p12 = scmp.lt.s32.totalorder %s924_s8, %s924_s8 }
  0x5b   :  { %701 = vmatprep.subr.bf16.mxu1 %v1100_v28  ;;  %v106_v14 = vsub.s32 0, %v1384_v13  ;;  %v110_v16 = vsub.s32 1, %v1384_v13  ;;  %v114_v21 = vsub.s32 2, %v1384_v13  ;;  %v118_v24 = vsub.s32 3, %v1384_v13  ;;  %v1008_v13 = vld [vmem:[%s1413_s6] ss:$0 sm:$0xff]  ;;  %p1287_p11 = scmp.ne.s32.totalorder %s924_s8, %s1286_s9  ;;  %p1292_p13 = scmp.lt.s32.totalorder %s1286_s9, %s1286_s9 }
  0x5d   :  { %667 = vmatpush1.bf16.msra.mxu0 %v1107_v33  ;;  %v107_v17 = vrot.slane %v102_v15, %v106_v14  ;;  %v111_v18 = vrot.slane %v102_v15, %v110_v16  ;;  %v115_v27 = vrot.slane %v102_v15, %v114_v21  ;;  %p1293_p0 = por %p1292_p13, %p1291_p12 }
  0x5e   :  { %702 = vmatpush1.bf16.msra.mxu1 %v1098_v31  ;;  %668 = vmatprep.subr.bf16.mxu0 %v1108_v34  ;;  %v119_v31 = vrot.slane %v102_v15, %v118_v24 }
  0x5f   :  { %703 = vmatprep.subr.bf16.mxu1 %v1106_v32  ;;  %v1169_v32 = vld [vmem:[#allocation10 + $0x38] sm:$0xff]   ;;  %p1294_p1 = pnand %p1293_p0, %p1287_p11 }
  0x61   :  { %669 = vmatpush1.bf16.msra.mxu0 %v1113_v37 }
  0x62   :  { %704 = vmatpush1.bf16.msra.mxu1 %v1104_v35  ;;  %670 = vmatprep.subr.bf16.mxu0 %v1114_v38  ;;  %v1170_v35 = vld [vmem:[#allocation10 + $0x70] sm:$0xff]  }
  0x63   :  { %705 = vmatprep.subr.bf16.mxu1 %v1112_v36 }
  0x65   :  { %671 = vmatpush2.bf16.msra.mxu0 %v1119_v41 }
  0x66   :  { %706 = vmatpush1.bf16.msra.mxu1 %v1110_v39  ;;  %672 = vmatprep.subr.bf16.mxu0 %v1120_v42  ;;  %v1171_v39 = vld [vmem:[#allocation10 + $0x30] sm:$0xff]   ;;  %v1172_v42 = vld [vmem:[#allocation10 + $0x68] sm:$0xff]  }
  0x67   :  { %707 = vmatprep.subr.bf16.mxu1 %v1118_v40 }
  0x69   :  { %673 = vmatpush2.bf16.msra.mxu0 %v1125_v45 }
  0x6a   :  { %708 = vmatpush1.bf16.msra.mxu1 %v1116_v43  ;;  %674 = vmatprep.subr.bf16.mxu0 %v1126_v46  ;;  %v1173_v46 = vld [vmem:[#allocation10 + $0x28] sm:$0xff]  }
  0x6b   :  { %709 = vmatprep.subr.bf16.mxu1 %v1124_v44 }
  0x6d   :  { %675 = vmatpush2.bf16.msra.mxu0 %v1131_v49  ;;  %v1175_v49 = vld [vmem:[#allocation10 + $0x20] sm:$0xff]  }
  0x6e   :  { %710 = vmatpush1.bf16.msra.mxu1 %v1122_v47  ;;  %676 = vmatprep.subr.bf16.mxu0 %v1132_v50  ;;  %v1176_v50 = vld [vmem:[#allocation10 + $0x58] sm:$0xff]  }
  0x6f   :  { %711 = vmatprep.subr.bf16.mxu1 %v1130_v48  ;;  %v1174_v48 = vld [vmem:[#allocation10 + $0x60] sm:$0xff]  }
  0x71   :  { %677 = vmatpush2.bf16.msra.mxu0 %v1137_v53  ;;  %v1179_v53 = vld [vmem:[#allocation10 + $0x10] sm:$0xff]  }
  0x72   :  { %712 = vmatpush2.bf16.msra.mxu1 %v1128_v51  ;;  %678 = vmatprep.subr.bf16.mxu0 %v1138_v54  ;;  %v1177_v51 = vld [vmem:[#allocation10 + $0x18] sm:$0xff]   ;;  %v1180_v54 = vld [vmem:[#allocation10 + $0x48] sm:$0xff]  }
  0x73   :  { %713 = vmatprep.subr.bf16.mxu1 %v1136_v52  ;;  %v1178_v52 = vld [vmem:[#allocation10 + $0x50] sm:$0xff]  }
  0x75   :  { %679 = vmatpush2.bf16.msra.mxu0 %v1143_v57  ;;  %v1183_v57 = vld [vmem:[#allocation10] sm:$0xff]  }
  0x76   :  { %714 = vmatpush2.bf16.msra.mxu1 %v1134_v55  ;;  %680 = vmatprep.subr.bf16.mxu0 %v1144_v58  ;;  %v1181_v55 = vld [vmem:[#allocation10 + $0x8] sm:$0xff]   ;;  %v322_v58 = vld [vmem:[%s1411_s4] sm:$0x3] }
  0x77   :  { %715 = vmatprep.subr.bf16.mxu1 %v1142_v56  ;;  %v1182_v56 = vld [vmem:[#allocation10 + $0x40] sm:$0xff]  }
  0x79   :  { %681 = vmatpush2.bf16.msra.mxu0 %v1149_v61  ;;  %v327_v61 = vrot.slane %v322_v58, %v106_v14 }
  0x7a   :  { %716 = vmatpush2.bf16.msra.mxu1 %v1140_v59  ;;  %682 = vmatprep.subr.bf16.mxu0 %v1150_v63  ;;  %v331_v63 = vrot.slane %v322_v58, %v110_v16 }
  0x7b   :  { %717 = vmatprep.subr.bf16.mxu1 %v1148_v60 }
  0x7d   :  { %683 = vmatpush2.bf16.msra.mxu0 %v1155_v2 }
  0x7e   :  { %718 = vmatpush2.bf16.msra.mxu1 %v1146_v62  ;;  %684 = vmatprep.subr.bf16.mxu0 %v1156_v3 }
  0x7f   :  { %719 = vmatprep.subr.bf16.mxu1 %v1154_v0 }
  0x81   :  { %685 = vmatpush2.bf16.msra.mxu0 %v1161_v6 }
  0x82   :  { %720 = vmatpush2.bf16.msra.mxu1 %v1152_v1  ;;  %1025 = vmatprep.subr.bf16.mxu0 %v1168_v11 }
  0x83   :  { %721 = vmatprep.subr.bf16.mxu1 %v1160_v4 }
  0x86   :  { %722 = vmatpush2.bf16.msra.mxu1 %v1158_v5 }
  0x87   :  { %723 = vmatprep.subr.bf16.mxu1 %v1164_v7 }
  0x8a   :  { %724 = vmatpush2.bf16.msra.mxu1 %v1162_v8 }
  0x8b   :  { %725 = vmatprep.subr.bf16.mxu1 %v1167_v9 }
  0x8e   :  { %726 = vmatpush2.bf16.msra.mxu1 %v1165_v10 }
 0x109   :  { %v202_v19 = vpop.f32.mrf.mxu1 }
 0x10a   :  { %v203_v20 = vadd.f32 %v202_v19, %v107_v17 }
 0x10b   :  { %v204_v22 = vpop.f32.mrf.mxu1 }
 0x10c   :  { %v205_v23 = vadd.f32 %v204_v22, %v111_v18  ;;  %v250_v25 = vmax.f32 %v203_v20, 0.0 }
 0x10d   :  { %v206_v26 = vpop.f32.mrf.mxu1 }
 0x10e   :  { %v251_v28 = vmax.f32 %v205_v23, 0.0  ;;  %v254_v33 = vpack.c.bf16 %v250_v25, %v250_v25 }
 0x10f   :  { %v207_v29 = vpop.f32.mrf.mxu1 }
 0x110   :  { %v255_v30 = vpack.c.bf16 %v251_v28, %v251_v28 }
 0x111   :  { %v243_v34 = vpop.f32.mrf.mxu1 }
 0x112   :  { %v244_v36 = vadd.f32 %v243_v34, %v115_v27  ;;  %686 = vmatprep.mubr.bf16.mxu0 %v255_v30 }
 0x113   :  { %v245_v37 = vpop.f32.mrf.mxu1  ;;  %687 = vmatmul.mubr.bf16.vlgmr.msra.gmra.mxu0 %v254_v33 }
 0x114   :  { %v246_v38 = vadd.f32 %v245_v37, %v119_v31  ;;  %1026 = vmatpush3.bf16.msra.mxu0 %v1169_v32  ;;  %v252_v40 = vmax.f32 %v244_v36, 0.0 }
 0x115   :  { %v247_v41 = vpop.f32.mrf.mxu1  ;;  %1027 = vmatprep.subr.bf16.mxu0 %v1170_v35 }
 0x116   :  { %v253_v43 = vmax.f32 %v246_v38, 0.0  ;;  %v256_v47 = vpack.c.bf16 %v252_v40, %v252_v40 }
 0x117   :  { %v248_v44 = vpop.f32.mrf.mxu1 }
 0x118   :  { %v257_v45 = vpack.c.bf16 %v253_v43, %v253_v43  ;;  %1028 = vmatpush3.bf16.msra.mxu0 %v1171_v39 }
 0x119   :  { %1029 = vmatprep.subr.bf16.mxu0 %v1172_v42 }
 0x11a   :  { %727 = vmatprep.mubr.bf16.mxu1 %v257_v45 }
 0x11b   :  { %728 = vmatmul.mubr.bf16.vlgmr.msra.gmra.mxu1 %v256_v47 }
 0x11c   :  { %1030 = vmatpush3.bf16.msra.mxu0 %v1173_v46 }
 0x11d   :  { %1031 = vmatprep.subr.bf16.mxu0 %v1174_v48 }
 0x120   :  { %1032 = vmatpush3.bf16.msra.mxu0 %v1175_v49 }
 0x121   :  { %1033 = vmatprep.subr.bf16.mxu0 %v1176_v50 }
 0x124   :  { %1034 = vmatpush3.bf16.msra.mxu0 %v1177_v51 }
 0x125   :  { %1035 = vmatprep.subr.bf16.mxu0 %v1178_v52 }
 0x128   :  { %1036 = vmatpush3.bf16.msra.mxu0 %v1179_v53 }
 0x129   :  { %1037 = vmatprep.subr.bf16.mxu0 %v1180_v54 }
 0x12c   :  { %1038 = vmatpush3.bf16.msra.mxu0 %v1181_v55 }
 0x12d   :  { %1039 = vmatprep.subr.bf16.mxu0 %v1182_v56 }
 0x130   :  { %1040 = vmatpush3.bf16.msra.mxu0 %v1183_v57 }
 0x1d3   :  { %v688_v59 = vpop.f32.mrf.mxu0 }
 0x1d4   :  { %v689_v1 = vadd.f32 %v688_v59, %v327_v61 }
 0x1d5   :  { %v690_v60 = vpop.f32.mrf.mxu0 }
 0x1d6   :  { %v691_v3 = vadd.f32 %v690_v60, %v331_v63 }
 0x1d7   :  { %v692_v62 = vpop.f32.mrf.mxu0 }
 0x1d9   :  { %v693_v0 = vpop.f32.mrf.mxu0 }
 0x1db   :  { %v729_v2 = vpop.f32.mrf.mxu1 }
 0x1dc   :  { %v730_v4 = vadd.f32 %v729_v2, %v689_v1 }
 0x1dd   :  { %v731_v5 = vpop.f32.mrf.mxu1 }
 0x1de   :  { %v732_v6 = vadd.f32 %v731_v5, %v691_v3  ;;  %v736_v7 = vmax.f32 %v730_v4, 0.0 }
 0x1df   :  { %v733_v8 = vpop.f32.mrf.mxu1 }
 0x1e0   :  { %v737_v9 = vmax.f32 %v732_v6, 0.0  ;;  %v738_v12 = vpack.c.bf16 %v736_v7, %v736_v7 }
 0x1e1   :  { %v734_v10 = vpop.f32.mrf.mxu1 }
 0x1e2   :  { %v739_v11 = vpack.c.bf16 %v737_v9, %v737_v9 }
 0x1e4   :  { %907 = vmatprep.mubr.bf16.mxu0 %v739_v11 }
 0x1e5   :  { %908 = vmatmul.mubr.bf16.vlgmr.msra.gmra.mxu0 %v738_v12 }
 0x2a5   :  { %v1041_v14 = vpop.f32.mrf.mxu0 }
 0x2a7   :  { %v1042_v15 = vpop.f32.mrf.mxu0 }
 0x2a8   :  { %v1043_v16 = vadd.f32 %v1042_v15, %v1041_v14 }
 0x2a9   :  { %v1044_v17 = vpop.f32.mrf.mxu0 }
 0x2aa   :  { %v910_v18 = vadd.f32 %v1043_v16, %v1008_v13 }
 0x2ab   :  { %v1045_v19 = vpop.f32.mrf.mxu0 }
 0x2ac   :  { %1184 = vtanh.f32 %v910_v18 }
 0x2b9   :  { %v1185_v20 = vpop.eup %1184 }
 0x2ba   :  { %916 = vst [vmem:[#allocation11] sm:$0xff] %v1185_v20 }
 0x2bb   :  { %1297 = shalt.err (!%p1294_p1)
}
 0x2bc   :  { %926 = dma.vmem_to_hbm [thread:$0]  %s924_s8, 128, %s1414_s7, [#allocation4]  }
 0x2bd   :  { %1312 = dma.done.wait [#allocation4], 128  }
 0x2be   :  { %1313 = vsyncadd [#allocation4], 4294967168 }
 0x2bf   :  { %930 = vsyncpa [#allocation3], 1 }
 0x2c0   :  { %931 = vsyncpa [#allocation6], 1 }
 0x2c1   :  { %932 = vsyncpa [#allocation9], 1 }
 0x2c2   :  { %933 = vsyncpa [#allocation4], 1 }

</bundles_post_ra>
